<compile_context>
chip_gen: v7x
topology: tpu7x:2x2x1
jax: 0.10.0
libtpu: 0.0.40
codegen_flags: <defaults>
</compile_context>

<pallas_src>
import jax
import jax.numpy as jnp
from jax.experimental import pallas as pl
from jax.experimental.pallas import tpu as pltpu


def _vae_kernel(x_ref, eps_ref,
                w1_ref, b1_ref, wh_ref, bh_ref,
                wd1_ref, bd1_ref, wd2_ref, bd2_ref,
                xrec_ref, mu_ref, logvar_ref):
    """VAE forward on one (TB, D_in) batch tile.

    Matmuls: bf16 operands on the MXU (native on v5e/v6e/v7x), f32 accumulate.
    Element-wise: f32 on VPU/EUP.
    """
    x = x_ref[...]                                    # (TB, D_in) f32
    eps = eps_ref[...]                                # (TB, Z)    f32
    z_dim = eps.shape[-1]

    # --- encoder trunk ---
    h = jnp.dot(x.astype(jnp.bfloat16), w1_ref[...],
                preferred_element_type=jnp.float32) + b1_ref[...]
    h = jnp.maximum(h, 0.0)                           # ReLU (VPU, f32)

    # --- fused mu/logvar heads: single MXU pass over wh = [wmu | wlv] ---
    ml = jnp.dot(h.astype(jnp.bfloat16), wh_ref[...],
                 preferred_element_type=jnp.float32) + bh_ref[...]
    mu = ml[:, :z_dim]
    logvar = ml[:, z_dim:]

    # --- reparameterize: z = mu + eps * exp(0.5 * logvar) ---
    std = jnp.exp(0.5 * logvar)                       # EUP transcendental (f32)
    z = mu + eps * std

    # --- decoder ---
    hd = jnp.dot(z.astype(jnp.bfloat16), wd1_ref[...],
                 preferred_element_type=jnp.float32) + bd1_ref[...]
    hd = jnp.maximum(hd, 0.0)
    x_rec = jnp.dot(hd.astype(jnp.bfloat16), wd2_ref[...],
                    preferred_element_type=jnp.float32) + bd2_ref[...]

    # --- write the module's three outputs directly (no wrapper re-slicing) ---
    xrec_ref[...] = x_rec
    mu_ref[...] = mu
    logvar_ref[...] = logvar


def _pick_batch_tile(B, max_tile=512):
    """Largest power-of-two tile <= max_tile that divides B and leaves >= 2
    grid steps (so v7x's two TensorCores both get work); otherwise the largest
    power-of-two divisor; otherwise the whole batch (single-step, full-extent
    block, which is always a legal BlockSpec)."""
    candidates = [t for t in (512, 256, 128, 64, 32, 16, 8) if t <= max_tile]
    for tb in candidates:
        if B % tb == 0 and B // tb >= 2:
            return tb
    for tb in candidates:
        if B % tb == 0:
            return tb
    return B


@jax.jit
def vae_forward(x, eps, kparams):
    """Batch-tiled pallas_call; weights stay VMEM-resident across grid steps."""
    B, D_in = x.shape
    Z = eps.shape[-1]

    TB = _pick_batch_tile(B)
    grid = (B // TB,)

    def tiled(cols):
        return pl.BlockSpec((TB, cols), lambda i: (i, 0))

    def resident(arr):
        # Constant block index -> fetched once, VMEM-resident across grid steps.
        return pl.BlockSpec(arr.shape, lambda i: (0, 0))

    out_shapes = (
        jax.ShapeDtypeStruct((B, D_in), jnp.float32),   # x_reconstructed
        jax.ShapeDtypeStruct((B, Z), jnp.float32),      # mu
        jax.ShapeDtypeStruct((B, Z), jnp.float32),      # logvar
    )

    return pl.pallas_call(
        _vae_kernel,
        out_shape=out_shapes,
        grid=grid,
        in_specs=[
            tiled(D_in),                       # x    (batch-tiled, auto double-buffered)
            tiled(Z),                          # eps
            resident(kparams["w1"]), resident(kparams["b1"]),
            resident(kparams["wh"]), resident(kparams["bh"]),
            resident(kparams["wd1"]), resident(kparams["bd1"]),
            resident(kparams["wd2"]), resident(kparams["bd2"]),
        ],
        out_specs=[tiled(D_in), tiled(Z), tiled(Z)],
        compiler_params=pltpu.CompilerParams(
            # Batch axis is fully independent -> shards across v7x's two
            # TensorCores; harmless no-op on v5e/v6e.  Default scoped VMEM
            # limit is ample (footprint is a few MiB), so no vmem_limit_bytes.
            dimension_semantics=("parallel",),
        ),
    )(x, eps,
      kparams["w1"], kparams["b1"], kparams["wh"], kparams["bh"],
      kparams["wd1"], kparams["bd1"], kparams["wd2"], kparams["bd2"])


def _init_linear(key, fan_in, fan_out):
    """PyTorch-style uniform(-1/sqrt(fan_in), 1/sqrt(fan_in)) init."""
    kw, kb = jax.random.split(key)
    bound = 1.0 / jnp.sqrt(jnp.float32(fan_in))
    w = jax.random.uniform(kw, (fan_in, fan_out), jnp.float32, -bound, bound)
    b = jax.random.uniform(kb, (1, fan_out), jnp.float32, -bound, bound)
    return w, b


def make_params(key, d_in, hidden, latent):
    """f32 master parameters; the mu/logvar heads are stored pre-fused as
    wh = [wmu | wlv], bh = [bmu | blv] so no per-call concat touches them."""
    k1, k2, k3, k4, k5 = jax.random.split(key, 5)
    w1, b1 = _init_linear(k1, d_in, hidden)
    wmu, bmu = _init_linear(k2, hidden, latent)
    wlv, blv = _init_linear(k3, hidden, latent)
    wd1, bd1 = _init_linear(k4, latent, hidden)
    wd2, bd2 = _init_linear(k5, hidden, d_in)
    wh = jnp.concatenate([wmu, wlv], axis=1)          # (H, 2Z)
    bh = jnp.concatenate([bmu, blv], axis=1)          # (1, 2Z)
    return dict(w1=w1, b1=b1, wh=wh, bh=bh, wd1=wd1, bd1=bd1, wd2=wd2, bd2=bd2)


def to_kernel_params(p):
    """One-time prep (outside the hot path): matmul weights -> bf16
    (MXU-native on v5e/v6e/v7x, halves weight HBM/VMEM traffic); biases stay
    f32 since they feed the f32 accumulator / VPU path."""
    bf = jnp.bfloat16
    return dict(w1=p["w1"].astype(bf), b1=p["b1"],
                wh=p["wh"].astype(bf), bh=p["bh"],
                wd1=p["wd1"].astype(bf), bd1=p["bd1"],
                wd2=p["wd2"].astype(bf), bd2=p["bd2"])


def vae_forward_ref(x, eps, p):
    """Pure-JAX f32 reference of the same forward pass."""
    Z = eps.shape[-1]
    h = jnp.maximum(x @ p["w1"] + p["b1"], 0.0)
    ml = h @ p["wh"] + p["bh"]
    mu, logvar = ml[:, :Z], ml[:, Z:]
    z = mu + eps * jnp.exp(0.5 * logvar)
    hd = jnp.maximum(z @ p["wd1"] + p["bd1"], 0.0)
    x_rec = hd @ p["wd2"] + p["bd2"]
    return x_rec, mu, logvar


if __name__ == "__main__":
    # Small-but-grid-exercising shapes: tile 128, grid of 2 steps (even for v7x).
    B, D_IN, HIDDEN, LATENT = 256, 64, 128, 32

    key = jax.random.PRNGKey(0)
    k_x, k_eps, k_p = jax.random.split(key, 3)

    x = jax.random.normal(k_x, (B, D_IN), jnp.float32)
    eps = jax.random.normal(k_eps, (B, LATENT), jnp.float32)  # torch.randn_like(std)
    params = make_params(k_p, D_IN, HIDDEN, LATENT)
    kparams = to_kernel_params(params)        # hoisted once, not per forward

    x_rec, mu, logvar = vae_forward(x, eps, kparams)
    jax.block_until_ready((x_rec, mu, logvar))

    # Correctness check vs f32 pure-JAX reference. Tolerances loosened for the
    # bf16 MXU operands (accumulation is still f32).
    x_rec_r, mu_r, logvar_r = vae_forward_ref(x, eps, params)
    assert x_rec.shape == (B, D_IN) and mu.shape == (B, LATENT) and logvar.shape == (B, LATENT)
    assert jnp.allclose(x_rec, x_rec_r, atol=5e-2, rtol=5e-2)
    assert jnp.allclose(mu, mu_r, atol=5e-2, rtol=5e-2)
    assert jnp.allclose(logvar, logvar_r, atol=5e-2, rtol=5e-2)

    print("KERNEL_OK")
</pallas_src>

<mosaic_0001>
module attributes {stable_mosaic.version = 11 : i64} {
  func.func @_vae_kernel(%arg0: i32, %arg1: memref<128x64xf32, #tpu.memory_space<vmem>>, %arg2: memref<128x32xf32, #tpu.memory_space<vmem>>, %arg3: memref<64x128xbf16, #tpu.memory_space<vmem>>, %arg4: memref<1x128xf32, #tpu.memory_space<vmem>>, %arg5: memref<128x64xbf16, #tpu.memory_space<vmem>>, %arg6: memref<1x64xf32, #tpu.memory_space<vmem>>, %arg7: memref<32x128xbf16, #tpu.memory_space<vmem>>, %arg8: memref<1x128xf32, #tpu.memory_space<vmem>>, %arg9: memref<128x64xbf16, #tpu.memory_space<vmem>>, %arg10: memref<1x64xf32, #tpu.memory_space<vmem>>, %arg11: memref<128x64xf32, #tpu.memory_space<vmem>>, %arg12: memref<128x32xf32, #tpu.memory_space<vmem>>, %arg13: memref<128x32xf32, #tpu.memory_space<vmem>>) attributes {dimension_semantics = [#tpu.dimension_semantics<parallel>], iteration_bounds = array<i64: 2>, scalar_prefetch = 0 : i64, scratch_operands = 0 : i64, tpu.core_type = #tpu.core_type<tc>, window_params = [{transform_indices = @transform_0, window_bounds = array<i64: 128, 64>}, {transform_indices = @transform_1, window_bounds = array<i64: 128, 32>}, {pipeline_mode = #tpu.pipeline_mode<synchronous>, transform_indices = @transform_2, window_bounds = array<i64: 64, 128>}, {pipeline_mode = #tpu.pipeline_mode<synchronous>, transform_indices = @transform_3, window_bounds = array<i64: 1, 128>}, {pipeline_mode = #tpu.pipeline_mode<synchronous>, transform_indices = @transform_4, window_bounds = array<i64: 128, 64>}, {pipeline_mode = #tpu.pipeline_mode<synchronous>, transform_indices = @transform_5, window_bounds = array<i64: 1, 64>}, {pipeline_mode = #tpu.pipeline_mode<synchronous>, transform_indices = @transform_6, window_bounds = array<i64: 32, 128>}, {pipeline_mode = #tpu.pipeline_mode<synchronous>, transform_indices = @transform_7, window_bounds = array<i64: 1, 128>}, {pipeline_mode = #tpu.pipeline_mode<synchronous>, transform_indices = @transform_8, window_bounds = array<i64: 128, 64>}, {pipeline_mode = #tpu.pipeline_mode<synchronous>, transform_indices = @transform_9, window_bounds = array<i64: 1, 64>}, {transform_indices = @transform_10, window_bounds = array<i64: 128, 64>}, {transform_indices = @transform_11, window_bounds = array<i64: 128, 32>}, {transform_indices = @transform_12, window_bounds = array<i64: 128, 32>}]} {
    %c0 = arith.constant 0 : index
    %c0_0 = arith.constant 0 : index
    %0 = vector.load %arg1[%c0, %c0_0] : memref<128x64xf32, #tpu.memory_space<vmem>>, vector<128x64xf32>
    %c0_1 = arith.constant 0 : index
    %c0_2 = arith.constant 0 : index
    %1 = vector.load %arg2[%c0_1, %c0_2] : memref<128x32xf32, #tpu.memory_space<vmem>>, vector<128x32xf32>
    %2 = arith.truncf %0 : vector<128x64xf32> to vector<128x64xbf16>
    %c0_3 = arith.constant 0 : index
    %c0_4 = arith.constant 0 : index
    %3 = vector.load %arg3[%c0_3, %c0_4] : memref<64x128xbf16, #tpu.memory_space<vmem>>, vector<64x128xbf16>
    %cst = arith.constant dense<0.000000e+00> : vector<128x128xf32>
    %4 = tpu.matmul %2, %3, %cst {dimension_numbers = #tpu.dot_dimension_numbers<[1], [0], [0], [1], [0, 0, 1, 1], [], []>} : vector<128x64xbf16>, vector<64x128xbf16>, vector<128x128xf32> -> vector<128x128xf32>
    %c0_5 = arith.constant 0 : index
    %c0_6 = arith.constant 0 : index
    %5 = vector.load %arg4[%c0_5, %c0_6] : memref<1x128xf32, #tpu.memory_space<vmem>>, vector<1x128xf32>
    %6 = vector.broadcast %5 : vector<1x128xf32> to vector<128x128xf32>
    %7 = arith.addf %4, %6 : vector<128x128xf32>
    %cst_7 = arith.constant 0.000000e+00 : f32
    %8 = vector.broadcast %cst_7 : f32 to vector<128x128xf32>
    %9 = arith.maximumf %7, %8 : vector<128x128xf32>
    %10 = arith.truncf %9 : vector<128x128xf32> to vector<128x128xbf16>
    %c0_8 = arith.constant 0 : index
    %c0_9 = arith.constant 0 : index
    %11 = vector.load %arg5[%c0_8, %c0_9] : memref<128x64xbf16, #tpu.memory_space<vmem>>, vector<128x64xbf16>
    %cst_10 = arith.constant dense<0.000000e+00> : vector<128x64xf32>
    %12 = tpu.matmul %10, %11, %cst_10 {dimension_numbers = #tpu.dot_dimension_numbers<[1], [0], [0], [1], [0, 0, 1, 1], [], []>} : vector<128x128xbf16>, vector<128x64xbf16>, vector<128x64xf32> -> vector<128x64xf32>
    %c0_11 = arith.constant 0 : index
    %c0_12 = arith.constant 0 : index
    %13 = vector.load %arg6[%c0_11, %c0_12] : memref<1x64xf32, #tpu.memory_space<vmem>>, vector<1x64xf32>
    %14 = vector.broadcast %13 : vector<1x64xf32> to vector<128x64xf32>
    %15 = arith.addf %12, %14 : vector<128x64xf32>
    %16 = vector.extract_strided_slice %15 {offsets = [0, 0], sizes = [128, 32], strides = [1, 1]} : vector<128x64xf32> to vector<128x32xf32>
    %17 = vector.extract_strided_slice %15 {offsets = [0, 32], sizes = [128, 32], strides = [1, 1]} : vector<128x64xf32> to vector<128x32xf32>
    %cst_13 = arith.constant 5.000000e-01 : f32
    %18 = vector.broadcast %cst_13 : f32 to vector<128x32xf32>
    %19 = arith.mulf %18, %17 : vector<128x32xf32>
    %20 = math.exp %19 : vector<128x32xf32>
    %21 = arith.mulf %1, %20 : vector<128x32xf32>
    %22 = arith.addf %16, %21 : vector<128x32xf32>
    %23 = arith.truncf %22 : vector<128x32xf32> to vector<128x32xbf16>
    %c0_14 = arith.constant 0 : index
    %c0_15 = arith.constant 0 : index
    %24 = vector.load %arg7[%c0_14, %c0_15] : memref<32x128xbf16, #tpu.memory_space<vmem>>, vector<32x128xbf16>
    %cst_16 = arith.constant dense<0.000000e+00> : vector<128x128xf32>
    %25 = tpu.matmul %23, %24, %cst_16 {dimension_numbers = #tpu.dot_dimension_numbers<[1], [0], [0], [1], [0, 0, 1, 1], [], []>} : vector<128x32xbf16>, vector<32x128xbf16>, vector<128x128xf32> -> vector<128x128xf32>
    %c0_17 = arith.constant 0 : index
    %c0_18 = arith.constant 0 : index
    %26 = vector.load %arg8[%c0_17, %c0_18] : memref<1x128xf32, #tpu.memory_space<vmem>>, vector<1x128xf32>
    %27 = vector.broadcast %26 : vector<1x128xf32> to vector<128x128xf32>
    %28 = arith.addf %25, %27 : vector<128x128xf32>
    %cst_19 = arith.constant 0.000000e+00 : f32
    %29 = vector.broadcast %cst_19 : f32 to vector<128x128xf32>
    %30 = arith.maximumf %28, %29 : vector<128x128xf32>
    %31 = arith.truncf %30 : vector<128x128xf32> to vector<128x128xbf16>
    %c0_20 = arith.constant 0 : index
    %c0_21 = arith.constant 0 : index
    %32 = vector.load %arg9[%c0_20, %c0_21] : memref<128x64xbf16, #tpu.memory_space<vmem>>, vector<128x64xbf16>
    %cst_22 = arith.constant dense<0.000000e+00> : vector<128x64xf32>
    %33 = tpu.matmul %31, %32, %cst_22 {dimension_numbers = #tpu.dot_dimension_numbers<[1], [0], [0], [1], [0, 0, 1, 1], [], []>} : vector<128x128xbf16>, vector<128x64xbf16>, vector<128x64xf32> -> vector<128x64xf32>
    %c0_23 = arith.constant 0 : index
    %c0_24 = arith.constant 0 : index
    %34 = vector.load %arg10[%c0_23, %c0_24] : memref<1x64xf32, #tpu.memory_space<vmem>>, vector<1x64xf32>
    %35 = vector.broadcast %34 : vector<1x64xf32> to vector<128x64xf32>
    %36 = arith.addf %33, %35 : vector<128x64xf32>
    %c0_25 = arith.constant 0 : index
    %c0_26 = arith.constant 0 : index
    %37 = vector.load %arg11[%c0_25, %c0_26] : memref<128x64xf32, #tpu.memory_space<vmem>>, vector<128x64xf32>
    tpu.vector_store %arg11[%c0_25, %c0_26], %36 {strides = array<i32>} : memref<128x64xf32, #tpu.memory_space<vmem>>, vector<128x64xf32>,
    %c0_27 = arith.constant 0 : index
    %c0_28 = arith.constant 0 : index
    %38 = vector.load %arg12[%c0_27, %c0_28] : memref<128x32xf32, #tpu.memory_space<vmem>>, vector<128x32xf32>
    tpu.vector_store %arg12[%c0_27, %c0_28], %16 {strides = array<i32>} : memref<128x32xf32, #tpu.memory_space<vmem>>, vector<128x32xf32>,
    %c0_29 = arith.constant 0 : index
    %c0_30 = arith.constant 0 : index
    %39 = vector.load %arg13[%c0_29, %c0_30] : memref<128x32xf32, #tpu.memory_space<vmem>>, vector<128x32xf32>
    tpu.vector_store %arg13[%c0_29, %c0_30], %17 {strides = array<i32>} : memref<128x32xf32, #tpu.memory_space<vmem>>, vector<128x32xf32>,
    return
  }
  func.func @transform_0(%arg0: i32) -> (i32, i32) {
    %c0_i32 = arith.constant 0 : i32
    %c0_i32_0 = arith.constant 0 : i32
    return %arg0, %c0_i32 : i32, i32
  }
  func.func @transform_1(%arg0: i32) -> (i32, i32) {
    %c0_i32 = arith.constant 0 : i32
    %c0_i32_0 = arith.constant 0 : i32
    return %arg0, %c0_i32 : i32, i32
  }
  func.func @transform_2(%arg0: i32) -> (i32, i32) {
    %c0_i32 = arith.constant 0 : i32
    %c0_i32_0 = arith.constant 0 : i32
    %c0_i32_1 = arith.constant 0 : i32
    return %c0_i32, %c0_i32_0 : i32, i32
  }
  func.func @transform_3(%arg0: i32) -> (i32, i32) {
    %c0_i32 = arith.constant 0 : i32
    %c0_i32_0 = arith.constant 0 : i32
    %c0_i32_1 = arith.constant 0 : i32
    return %c0_i32, %c0_i32_0 : i32, i32
  }
  func.func @transform_4(%arg0: i32) -> (i32, i32) {
    %c0_i32 = arith.constant 0 : i32
    %c0_i32_0 = arith.constant 0 : i32
    %c0_i32_1 = arith.constant 0 : i32
    return %c0_i32, %c0_i32_0 : i32, i32
  }
  func.func @transform_5(%arg0: i32) -> (i32, i32) {
    %c0_i32 = arith.constant 0 : i32
    %c0_i32_0 = arith.constant 0 : i32
    %c0_i32_1 = arith.constant 0 : i32
    return %c0_i32, %c0_i32_0 : i32, i32
  }
  func.func @transform_6(%arg0: i32) -> (i32, i32) {
    %c0_i32 = arith.constant 0 : i32
    %c0_i32_0 = arith.constant 0 : i32
    %c0_i32_1 = arith.constant 0 : i32
    return %c0_i32, %c0_i32_0 : i32, i32
  }
  func.func @transform_7(%arg0: i32) -> (i32, i32) {
    %c0_i32 = arith.constant 0 : i32
    %c0_i32_0 = arith.constant 0 : i32
    %c0_i32_1 = arith.constant 0 : i32
    return %c0_i32, %c0_i32_0 : i32, i32
  }
  func.func @transform_8(%arg0: i32) -> (i32, i32) {
    %c0_i32 = arith.constant 0 : i32
    %c0_i32_0 = arith.constant 0 : i32
    %c0_i32_1 = arith.constant 0 : i32
    return %c0_i32, %c0_i32_0 : i32, i32
  }
  func.func @transform_9(%arg0: i32) -> (i32, i32) {
    %c0_i32 = arith.constant 0 : i32
    %c0_i32_0 = arith.constant 0 : i32
    %c0_i32_1 = arith.constant 0 : i32
    return %c0_i32, %c0_i32_0 : i32, i32
  }
  func.func @transform_10(%arg0: i32) -> (i32, i32) {
    %c0_i32 = arith.constant 0 : i32
    %c0_i32_0 = arith.constant 0 : i32
    return %arg0, %c0_i32 : i32, i32
  }
  func.func @transform_11(%arg0: i32) -> (i32, i32) {
    %c0_i32 = arith.constant 0 : i32
    %c0_i32_0 = arith.constant 0 : i32
    return %arg0, %c0_i32 : i32, i32
  }
  func.func @transform_12(%arg0: i32) -> (i32, i32) {
    %c0_i32 = arith.constant 0 : i32
    %c0_i32_0 = arith.constant 0 : i32
    return %arg0, %c0_i32 : i32, i32
  }
}

</mosaic_0001>

<bundles_post_ra>
// kernel: vae_forward.1
= control target key start
LH: loop header
LB: loop body
LE: loop exit
PB: predicated region body
PF: predicated region fallthrough
CT: control target
= control target key end

     0   :  { %s1971_s21 = smov 0   ;;  %s2412_s0 = inlined_call_operand.vmem [shape: f32[256,64], index: 0, kind: input, shape index: {}]   ;;  %s2413_s1 = inlined_call_operand.vmem [shape: f32[256,32], index: 1, kind: input, shape index: {}]   ;;  %s2414_s2 = inlined_call_operand.vmem [shape: bf16[64,128], index: 2, kind: input, shape index: {}]   ;;  %s2415_s3 = inlined_call_operand.vmem [shape: f32[1,128], index: 3, kind: input, shape index: {}]   ;;  %s2416_s4 = inlined_call_operand.vmem [shape: bf16[128,64], index: 4, kind: input, shape index: {}]   ;;  %s2417_s5 = inlined_call_operand.vmem [shape: f32[1,64], index: 5, kind: input, shape index: {}]   ;;  %s2418_s6 = inlined_call_operand.vmem [shape: bf16[32,128], index: 6, kind: input, shape index: {}]   ;;  %s2419_s7 = inlined_call_operand.vmem [shape: f32[1,128], index: 7, kind: input, shape index: {}]   ;;  %s2420_s8 = inlined_call_operand.vmem [shape: bf16[128,64], index: 8, kind: input, shape index: {}]   ;;  %s2421_s9 = inlined_call_operand.vmem [shape: f32[1,64], index: 9, kind: input, shape index: {}]   ;;  %s2422_s10 = inlined_call_operand.vmem [shape: f32[256,64], index: 10, kind: output, shape index: {0}]   ;;  %s2423_s11 = inlined_call_operand.vmem [shape: f32[256,32], index: 11, kind: output, shape index: {1}]   ;;  %s2424_s12 = inlined_call_operand.vmem [shape: f32[256,32], index: 12, kind: output, shape index: {2}]  }
   0x1 LB: > { %s1597_s22 = sadd.s32 4294967295, %s1903_s21   ;;  %p1601_p0 = scmp.ge.s32.totalorder %s1903_s21, 1  ;;  %s1903_s21 = sphi %s1971_s21, %s23_s21  }
   0x2   : > { %p379_p1 = scmp.lt.s32.totalorder %s1903_s21, 3 }
   0x4   : > { %p380_p2 = pnand %p1601_p0, %p379_p1 }
   0x5   : > { %v1843_v0 = vld [vmem:[%s2414_s2] sm:$0xff] (!%p380_p2)   ;;  %s1602_s25 = sshll.u32 (!%p380_p2), %s1597_s22, 4  ;;  %v1844_v1 = vld [vmem:[%s2414_s2 + $0x8] sm:$0xff] (!%p380_p2)   ;;  %v1845_v2 = vld [vmem:[%s2414_s2 + $0x10] sm:$0xff] (!%p380_p2)   ;;  %vm546_vm0 = vcmask (!%p380_p2), 523264   ;;  %vm1035_vm1 = vcmask (!%p380_p2), 261120  }
   0x6   : > { %383 = sbr.rel (%p380_p2) target bundleno = 1065 (0x429), region = 60  ;;  %p437_p3 = scmp.lt.s32.totalorder (!%p380_p2), %s1602_s25, 31  ;;  %1710 = vmatprep.subr.bf16.mxu0 (!%p380_p2), %v1843_v0  ;;  %v1847_v3 = vld [vmem:[%s2416_s4] sm:$0xff] (!%p380_p2)   ;;  %v1848_v4 = vld [vmem:[%s2416_s4 + $0x8] sm:$0xff] (!%p380_p2)   ;;  %v1846_v7 = vld [vmem:[%s2414_s2 + $0x18] sm:$0xff] (!%p380_p2)  }
   0x7   : > { %1711 = vmatpush3.bf16.msra.mxu0 (!%p380_p2), %v1843_v0  ;;  %1734 = vmatprep.subr.bf16.mxu1 (!%p380_p2), %v1847_v3  ;;  %v1849_v9 = vld [vmem:[%s2416_s4 + $0x10] sm:$0xff] (!%p380_p2)   ;;  %v1850_v14 = vld [vmem:[%s2416_s4 + $0x18] sm:$0xff] (!%p380_p2)   ;;  %v1851_v17 = vld [vmem:[%s2416_s4 + $0x20] sm:$0xff] (!%p380_p2)   ;;  %s1905_s30 = smov (!%p380_p2), 96  }
   0x8   : > { %1712 = vmatprep.subr.bf16.mxu0 (!%p380_p2), %v1844_v1  ;;  %1735 = vmatpush3.bf16.msra.mxu1 (!%p380_p2), %v1847_v3  ;;  %v1852_v22 = vld [vmem:[%s2416_s4 + $0x28] sm:$0xff] (!%p380_p2)   ;;  %v1853_v34 = vld [vmem:[%s2416_s4 + $0x30] sm:$0xff] (!%p380_p2)   ;;  %v1854_v35 = vld [vmem:[%s2416_s4 + $0x38] sm:$0xff] (!%p380_p2)  }
   0x9   : > { %1736 = vmatprep.subr.bf16.mxu1 (!%p380_p2), %v1848_v4  ;;  %v1612_v36 = vld [vmem:[%s2415_s3] ss:$0 sm:$0xff] (!%p380_p2) }
   0xb   : > { %1713 = vmatpush3.bf16.msra.mxu0 (!%p380_p2), %v1844_v1 }
   0xc   : > { %1714 = vmatprep.subr.bf16.mxu0 (!%p380_p2), %v1845_v2  ;;  %1737 = vmatpush3.bf16.msra.mxu1 (!%p380_p2), %v1848_v4 }
   0xd   : > { %s2426_s25 = smov (!%p437_p3, %s1602_s25), 31  ;;  %1738 = vmatprep.subr.bf16.mxu1 %v1849_v9 }
   0xe   : > { %s1991_s14 = sshll.u32 %s2426_s25, 3 }
   0xf   : > { %s2000_s19 = scalar_lea.vmem %s2412_s0, %s1991_s14  ;;  %1715 = vmatpush3.bf16.msra.mxu0 %v1845_v2  ;;  %s2065_s29 = scalar_lea.vmem %s2423_s11, %s1991_s14 }
  0x10   : > { %v467_v5 = vld [vmem:[%s2000_s19] sm:$0xff]  ;;  %v468_v6 = vld [vmem:[%s2000_s19 + $0x8] sm:$0xff]  ;;  %v469_v10 = vld [vmem:[%s2000_s19 + $0x10] sm:$0xff]  ;;  %1716 = vmatprep.subr.bf16.mxu0 %v1846_v7  ;;  %1739 = vmatpush3.bf16.msra.mxu1 %v1849_v9  ;;  %s2318_s15 = scalar_lea.vmem %s2424_s12, %s1991_s14  ;;  %s2375_s27 = scalar_lea.vmem %s2422_s10, %s1991_s14 }
  0x11   : > { %v499_v8 = vpack.c.bf16 %v468_v6, %v467_v5  ;;  %v470_v11 = vld [vmem:[%s2000_s19 + $0x18] sm:$0xff]  ;;  %v471_v12 = vld [vmem:[%s2000_s19 + $0x20] sm:$0xff]  ;;  %v472_v13 = vld [vmem:[%s2000_s19 + $0x28] sm:$0xff]  ;;  %1740 = vmatprep.subr.bf16.mxu1 %v1850_v14 }
  0x12   : > { %v500_v15 = vpack.c.bf16 %v470_v11, %v469_v10  ;;  %v501_v16 = vpack.c.bf16 %v472_v13, %v471_v12  ;;  %v473_v18 = vld [vmem:[%s2000_s19 + $0x30] sm:$0xff]  ;;  %v474_v19 = vld [vmem:[%s2000_s19 + $0x38] sm:$0xff]  ;;  %v475_v20 = vld [vmem:[%s2000_s19 + $0x40] sm:$0xff] }
  0x13   : > { %1718 = vmatprep.mubr.msk.bf16.mxu0 %vm546_vm0, %v499_v8  ;;  %1717 = vmatpush3.bf16.msra.mxu0 %v1846_v7  ;;  %v476_v21 = vld [vmem:[%s2000_s19 + $0x48] sm:$0xff]  ;;  %v502_v23 = vpack.c.bf16 %v474_v19, %v473_v18  ;;  %v477_v25 = vld [vmem:[%s2000_s19 + $0x50] sm:$0xff]  ;;  %v478_v26 = vld [vmem:[%s2000_s19 + $0x58] sm:$0xff] }
  0x14   : > { %1741 = vmatpush3.bf16.msra.mxu1 %v1850_v14  ;;  %v503_v24 = vpack.c.bf16 %v476_v21, %v475_v20  ;;  %v479_v27 = vld [vmem:[%s2000_s19 + $0x60] sm:$0xff]  ;;  %v480_v28 = vld [vmem:[%s2000_s19 + $0x68] sm:$0xff]  ;;  %v504_v29 = vpack.c.bf16 %v478_v26, %v477_v25  ;;  %v481_v31 = vld [vmem:[%s2000_s19 + $0x70] sm:$0xff] }
  0x15   : > { %1742 = vmatprep.subr.bf16.mxu1 %v1851_v17  ;;  %v505_v30 = vpack.c.bf16 %v480_v28, %v479_v27  ;;  %v482_v32 = vld [vmem:[%s2000_s19 + $0x78] sm:$0xff] }
  0x16   : > { %1719 = vmatmul.mubr.msk.bf16.vlgmr.msra.gmra.mrb[0].mxu0 %vm546_vm0, %v500_v15  ;;  %v506_v33 = vpack.c.bf16 %v482_v32, %v481_v31  ;;  %v2059_v31 = vld [vmem:[%s2417_s5] ss:$0 sm:$0xff] }
  0x17   : > { %1722 = vmatprep.mubr.msk.bf16.mxu0 %vm546_vm0, %v501_v16 }
  0x18   : > { %1743 = vmatpush3.bf16.msra.mxu1 %v1851_v17 }
  0x19   : > { %1744 = vmatprep.subr.bf16.mxu1 %v1852_v22 }
  0x1c   : > { %1745 = vmatpush3.bf16.msra.mxu1 %v1852_v22 }
  0x1d   : > { %1746 = vmatprep.subr.bf16.mxu1 %v1853_v34 }
  0x1e   : > { %1723 = vmatmul.mubr.msk.bf16.gmra.mrb[4].mxu0 %vm546_vm0, %v502_v23 }
  0x1f   : > { %1726 = vmatprep.mubr.msk.bf16.mxu0 %vm546_vm0, %v503_v24 }
  0x20   : > { %1747 = vmatpush3.bf16.msra.mxu1 %v1853_v34 }
  0x21   : > { %1748 = vmatprep.subr.bf16.mxu1 %v1854_v35 }
  0x24   : > { %1749 = vmatpush3.bf16.msra.mxu1 %v1854_v35 }
  0x26   : > { %1727 = vmatmul.mubr.msk.bf16.gmra.mrb[8].mxu0 %vm546_vm0, %v504_v29  ;;  %v1855_v29 = vld [vmem:[%s2418_s6] sm:$0xff]  }
  0x27   : > { %1730 = vmatprep.mubr.msk.bf16.mxu0 %vm546_vm0, %v505_v30  ;;  %v1856_v30 = vld [vmem:[%s2418_s6 + $0x8] sm:$0xff]   ;;  %1766 = vmatprep.subr.bf16.mxu0 %v1855_v29 }
  0x28   : > { %1767 = vmatpush3.bf16.msra.mxu0 %v1855_v29 }
  0x29   : > { %1768 = vmatprep.subr.bf16.mxu0 %v1856_v30 }
  0x2c   : > { %1769 = vmatpush3.bf16.msra.mxu0 %v1856_v30 }
  0x2e   : > { %1731 = vmatmul.mubr.msk.bf16.gmra.mrb[12].mxu0 %vm546_vm0, %v506_v33 }
  0xe9   : > { %v1720_v37 = vpop.f32.mrb[0].mxu0 }
  0xea   : > { %v614_v38 = vadd.f32 %v1720_v37, %v1612_v36  ;;  %v605_v39 = vpop.f32.mrb[1].mxu0 }
  0xeb   : > { %v606_v40 = vadd.f32 %v1612_v36, %v605_v39  ;;  %v1721_v41 = vpop.f32.mrb[2].mxu0 }
  0xec   : > { %v617_v42 = vadd.f32 %v1721_v41, %v1612_v36  ;;  %v608_v43 = vpop.f32.mrb[3].mxu0  ;;  %v670_v45 = vmax.f32 %v614_v38, 0.0 }
  0xed   : > { %v609_v44 = vadd.f32 %v1612_v36, %v608_v43  ;;  %v668_v47 = vmax.f32 %v606_v40, 0.0 }
  0xee   : > { %v671_v46 = vmax.f32 %v617_v42, 0.0 }
  0xef   : > { %v669_v48 = vmax.f32 %v609_v44, 0.0 }
  0xf0   : > { %v685_v49 = vpack.c.bf16 %v671_v46, %v670_v45 }
  0xf1   : > { %v1724_v50 = vpop.f32.mrb[4].mxu0  ;;  %v684_v51 = vpack.c.bf16 %v669_v48, %v668_v47 }
  0xf2   : > { %v630_v52 = vadd.f32 %v1724_v50, %v1612_v36  ;;  %v621_v53 = vpop.f32.mrb[5].mxu0 }
  0xf3   : > { %v622_v54 = vadd.f32 %v1612_v36, %v621_v53  ;;  %v1725_v55 = vpop.f32.mrb[6].mxu0  ;;  %1750 = vmatprep.mubr.bf16.mxu1 %v684_v51 }
  0xf4   : > { %v633_v56 = vadd.f32 %v1725_v55, %v1612_v36  ;;  %v624_v57 = vpop.f32.mrb[7].mxu0  ;;  %1751 = vmatmul.mubr.bf16.vlgmr.msra.gmra.mrb[0].mxu1 %v685_v49  ;;  %v674_v59 = vmax.f32 %v630_v52, 0.0 }
  0xf5   : > { %v625_v58 = vadd.f32 %v1612_v36, %v624_v57  ;;  %v672_v61 = vmax.f32 %v622_v54, 0.0 }
  0xf6   : > { %v675_v60 = vmax.f32 %v633_v56, 0.0 }
  0xf7   : > { %v673_v62 = vmax.f32 %v625_v58, 0.0 }
  0xf8   : > { %v687_v63 = vpack.c.bf16 %v675_v60, %v674_v59 }
  0xf9   : > { %v686_v0 = vpack.c.bf16 %v673_v62, %v672_v61  ;;  %v1728_v1 = vpop.f32.mrb[8].mxu0 }
  0xfa   : > { %v646_v2 = vadd.f32 %v1728_v1, %v1612_v36  ;;  %v637_v3 = vpop.f32.mrb[9].mxu0 }
  0xfb   : > { %v638_v4 = vadd.f32 %v1612_v36, %v637_v3  ;;  %v1729_v5 = vpop.f32.mrb[10].mxu0  ;;  %1754 = vmatprep.mubr.bf16.mxu1 %v686_v0 }
  0xfc   : > { %v649_v6 = vadd.f32 %v1729_v5, %v1612_v36  ;;  %v640_v7 = vpop.f32.mrb[11].mxu0  ;;  %1755 = vmatmul.mubr.bf16.gmra.mrb[4].mxu1 %v687_v63  ;;  %v678_v9 = vmax.f32 %v646_v2, 0.0 }
  0xfd   : > { %v641_v8 = vadd.f32 %v1612_v36, %v640_v7  ;;  %v676_v11 = vmax.f32 %v638_v4, 0.0 }
  0xfe   : > { %v679_v10 = vmax.f32 %v649_v6, 0.0 }
  0xff   : > { %v677_v12 = vmax.f32 %v641_v8, 0.0 }
 0x100   : > { %v689_v13 = vpack.c.bf16 %v679_v10, %v678_v9 }
 0x101   : > { %v688_v14 = vpack.c.bf16 %v677_v12, %v676_v11  ;;  %v1732_v15 = vpop.f32.mrb[12].mxu0 }
 0x102   : > { %v662_v16 = vadd.f32 %v1732_v15, %v1612_v36  ;;  %v653_v17 = vpop.f32.mrb[13].mxu0 }
 0x103   : > { %v654_v18 = vadd.f32 %v1612_v36, %v653_v17  ;;  %v1733_v19 = vpop.f32.mrb[14].mxu0  ;;  %1758 = vmatprep.mubr.bf16.mxu1 %v688_v14 }
 0x104   : > { %v665_v20 = vadd.f32 %v1733_v19, %v1612_v36  ;;  %v656_v21 = vpop.f32.mrb[15].mxu0  ;;  %1759 = vmatmul.mubr.bf16.gmra.mrb[8].mxu1 %v689_v13  ;;  %v682_v23 = vmax.f32 %v662_v16, 0.0 }
 0x105   : > { %v657_v22 = vadd.f32 %v1612_v36, %v656_v21  ;;  %v680_v25 = vmax.f32 %v654_v18, 0.0 }
 0x106   : > { %v683_v24 = vmax.f32 %v665_v20, 0.0 }
 0x107   : > { %v681_v26 = vmax.f32 %v657_v22, 0.0 }
 0x108   : > { %v691_v27 = vpack.c.bf16 %v683_v24, %v682_v23 }
 0x109   : > { %v690_v28 = vpack.c.bf16 %v681_v26, %v680_v25 }
 0x10b   : > { %1762 = vmatprep.mubr.bf16.mxu1 %v690_v28 }
 0x10c   : > { %1763 = vmatmul.mubr.bf16.gmra.mrb[12].mxu1 %v691_v27 }
 0x1c7   : > { %v1752_v32 = vpop.f32.mrb[0].mxu1 }
 0x1c8   : > { %v2068_v33 = vadd.f32 %v1752_v32, %v2059_v31  ;;  %v797_v34 = vpop.f32.mrb[1].mxu1 }
 0x1c9   : > { %v2071_v35 = vadd.f32 %v2059_v31, %v797_v34  ;;  %v1753_v36 = vpop.f32.mrb[2].mxu1 }
 0x1ca   : > { %v862_v37 = vmul.f32 0.5, %v2068_v33  ;;  %1367 = vst.msk [vmem:[%s2065_s29 + $0x10] sm:$0xff] %vm1035_vm1, %v2068_v33  ;;  %v2078_v38 = vadd.f32 %v1753_v36, %v2059_v31  ;;  %v800_v39 = vpop.f32.mrb[3].mxu1 }
 0x1cb   : > { %v860_v40 = vmul.f32 0.5, %v2071_v35  ;;  %1365 = vst.msk [vmem:[%s2065_s29] sm:$0xff] %vm1035_vm1, %v2071_v35  ;;  %v2085_v41 = vadd.f32 %v2059_v31, %v800_v39 }
 0x1cc   : > { %v880_v42 = vmul.f32 1.442695, %v862_v37  ;;  %v863_v43 = vmul.f32 0.5, %v2078_v38  ;;  %1368 = vst.msk [vmem:[%s2065_s29 + $0x18] sm:$0xff] %vm1035_vm1, %v2078_v38 }
 0x1cd   : > { %v876_v44 = vmul.f32 1.442695, %v860_v40  ;;  %v861_v45 = vmul.f32 0.5, %v2085_v41  ;;  %1366 = vst.msk [vmem:[%s2065_s29 + $0x8] sm:$0xff] %vm1035_vm1, %v2085_v41 }
 0x1ce   : > { %1865 = vpow2.f32 %v880_v42  ;;  %v882_v46 = vmul.f32 1.442695, %v863_v43 }
 0x1cf   : > { %1867 = vpow2.f32 %v876_v44  ;;  %v878_v47 = vmul.f32 1.442695, %v861_v45  ;;  %v1756_v48 = vpop.f32.mrb[4].mxu1 }
 0x1d0   : > { %v2096_v49 = vadd.f32 %v1756_v48, %v2059_v31  ;;  %v813_v50 = vpop.f32.mrb[5].mxu1  ;;  %1869 = vpow2.f32 %v882_v46 }
 0x1d1   : > { %v2099_v51 = vadd.f32 %v2059_v31, %v813_v50  ;;  %v1757_v52 = vpop.f32.mrb[6].mxu1  ;;  %1871 = vpow2.f32 %v878_v47 }
 0x1d2   : > { %1371 = vst.msk [vmem:[%s2065_s29 + $0x30] sm:$0xff] %vm1035_vm1, %v2096_v49  ;;  %v2105_v53 = vadd.f32 %v1757_v52, %v2059_v31  ;;  %v816_v54 = vpop.f32.mrb[7].mxu1  ;;  %v866_v55 = vmul.f32 0.5, %v2096_v49 }
 0x1d3   : > { %v864_v56 = vmul.f32 0.5, %v2099_v51  ;;  %1369 = vst.msk [vmem:[%s2065_s29 + $0x20] sm:$0xff] %vm1035_vm1, %v2099_v51  ;;  %v2113_v57 = vadd.f32 %v2059_v31, %v816_v54 }
 0x1d4   : > { %1372 = vst.msk [vmem:[%s2065_s29 + $0x38] sm:$0xff] %vm1035_vm1, %v2105_v53  ;;  %v867_v59 = vmul.f32 0.5, %v2105_v53  ;;  %v888_v61 = vmul.f32 1.442695, %v866_v55  ;;  %v1857_v55 = vld [vmem:[%s2420_s8] sm:$0xff]  }
 0x1d5   : > { %v884_v58 = vmul.f32 1.442695, %v864_v56  ;;  %v865_v60 = vmul.f32 0.5, %v2113_v57  ;;  %1370 = vst.msk [vmem:[%s2065_s29 + $0x28] sm:$0xff] %vm1035_vm1, %v2113_v57  ;;  %1786 = vmatprep.subr.bf16.mxu0 %v1857_v55  ;;  %v2221_v56 = vld [vmem:[%s2420_s8 + $0x8] sm:$0xff]   ;;  %1818 = vmatprep.subr.bf16.mxu1 %v1857_v55 }
 0x1d6   : > { %v890_v4 = vmul.f32 1.442695, %v867_v59  ;;  %1826 = vmatpush3.bf16.msra.mxu1 %v1857_v55  ;;  %v2242_v59 = vld [vmem:[%s2420_s8 + $0x18] sm:$0xff]  }
 0x1d7   : > { %1873 = vpow2.f32 %v884_v58  ;;  %v886_v62 = vmul.f32 1.442695, %v865_v60  ;;  %v1760_v63 = vpop.f32.mrb[8].mxu1  ;;  %1819 = vmatprep.subr.bf16.mxu1 %v2221_v56  ;;  %v2231_v58 = vld [vmem:[%s2420_s8 + $0x10] sm:$0xff]   ;;  %v2253_v60 = vld [vmem:[%s2420_s8 + $0x20] sm:$0xff]  }
 0x1d8   : > { %v1866_v0 = vpop.eup %1865  ;;  %v2124_v1 = vadd.f32 %v1760_v63, %v2059_v31  ;;  %v829_v2 = vpop.f32.mrb[9].mxu1 }
 0x1d9   : > { %v1868_v3 = vpop.eup %1867  ;;  %1875 = vpow2.f32 %v886_v62  ;;  %v2127_v5 = vadd.f32 %v2059_v31, %v829_v2  ;;  %928 = vrot.lane.b32.xlu1 %v1866_v0, %s1905_s30  ;;  %v1761_v6 = vpop.f32.mrb[10].mxu1 }
 0x1da   : > { %1375 = vst.msk [vmem:[%s2065_s29 + $0x50] sm:$0xff] %vm1035_vm1, %v2124_v1  ;;  %v2134_v7 = vadd.f32 %v1761_v6, %v2059_v31  ;;  %v832_v8 = vpop.f32.mrb[11].mxu1  ;;  %924 = vrot.lane.b32.xlu0 %v1868_v3, %s1905_s30  ;;  %1877 = vpow2.f32 %v888_v61  ;;  %v870_v9 = vmul.f32 0.5, %v2124_v1  ;;  %v1870_v12 = vpop.eup %1869  ;;  %1827 = vmatpush3.bf16.msra.mxu1 %v2221_v56  ;;  %v2260_v61 = vld [vmem:[%s2420_s8 + $0x28] sm:$0xff]  }
 0x1db   : > { %v868_v10 = vmul.f32 0.5, %v2127_v5  ;;  %1373 = vst.msk [vmem:[%s2065_s29 + $0x40] sm:$0xff] %vm1035_vm1, %v2127_v5  ;;  %v2143_v11 = vadd.f32 %v2059_v31, %v832_v8  ;;  %v1872_v13 = vpop.eup %1871  ;;  %1879 = vpow2.f32 %v890_v4  ;;  %1820 = vmatprep.subr.bf16.mxu1 %v2231_v58 }
 0x1dc   : > { %1376 = vst.msk [vmem:[%s2065_s29 + $0x58] sm:$0xff] %vm1035_vm1, %v2134_v7  ;;  %v871_v15 = vmul.f32 0.5, %v2134_v7  ;;  %v896_v17 = vmul.f32 1.442695, %v870_v9 }
 0x1dd   : > { %v892_v14 = vmul.f32 1.442695, %v868_v10  ;;  %v869_v16 = vmul.f32 0.5, %v2143_v11  ;;  %1374 = vst.msk [vmem:[%s2065_s29 + $0x48] sm:$0xff] %vm1035_vm1, %v2143_v11  ;;  %930 = vrot.lane.b32.xlu1 %v1870_v12, %s1905_s30 }
 0x1de   : > { %926 = vrot.lane.b32.xlu0 %v1872_v13, %s1905_s30  ;;  %v898_v23 = vmul.f32 1.442695, %v871_v15  ;;  %1828 = vmatpush3.bf16.msra.mxu1 %v2231_v58 }
 0x1df   : > { %1881 = vpow2.f32 %v892_v14  ;;  %v894_v18 = vmul.f32 1.442695, %v869_v16  ;;  %v1764_v19 = vpop.f32.mrb[12].mxu1  ;;  %1821 = vmatprep.subr.bf16.mxu1 %v2242_v59 }
 0x1e0   : > { %v2156_v20 = vadd.f32 %v1764_v19, %v2059_v31  ;;  %v845_v21 = vpop.f32.mrb[13].mxu1 }
 0x1e1   : > { %v1874_v22 = vpop.eup %1873  ;;  %1883 = vpow2.f32 %v894_v18  ;;  %v2159_v24 = vadd.f32 %v2059_v31, %v845_v21  ;;  %v1765_v25 = vpop.f32.mrb[14].mxu1 }
 0x1e2   : > { %1379 = vst.msk [vmem:[%s2065_s29 + $0x70] sm:$0xff] %vm1035_vm1, %v2156_v20  ;;  %v2165_v26 = vadd.f32 %v1765_v25, %v2059_v31  ;;  %v848_v27 = vpop.f32.mrb[15].mxu1  ;;  %932 = vrot.lane.b32.xlu0 %v1874_v22, %s1905_s30  ;;  %1885 = vpow2.f32 %v896_v17  ;;  %v874_v29 = vmul.f32 0.5, %v2156_v20  ;;  %1829 = vmatpush3.bf16.msra.mxu1 %v2242_v59 }
 0x1e3   : > { %v1876_v28 = vpop.eup %1875  ;;  %v872_v30 = vmul.f32 0.5, %v2159_v24  ;;  %1377 = vst.msk [vmem:[%s2065_s29 + $0x60] sm:$0xff] %vm1035_vm1, %v2159_v24  ;;  %v2174_v32 = vadd.f32 %v2059_v31, %v848_v27  ;;  %1887 = vpow2.f32 %v898_v23  ;;  %1822 = vmatprep.subr.bf16.mxu1 %v2253_v60 }
 0x1e4   : > { %1380 = vst.msk [vmem:[%s2065_s29 + $0x78] sm:$0xff] %vm1035_vm1, %v2165_v26  ;;  %934 = vrot.lane.b32.xlu1 %v1876_v28, %s1905_s30  ;;  %v1878_v34 = vpop.eup %1877  ;;  %v875_v37 = vmul.f32 0.5, %v2165_v26  ;;  %v904_v31 = vmul.f32 1.442695, %v874_v29 }
 0x1e5   : > { %v900_v36 = vmul.f32 1.442695, %v872_v30  ;;  %v873_v39 = vmul.f32 0.5, %v2174_v32  ;;  %1378 = vst.msk [vmem:[%s2065_s29 + $0x68] sm:$0xff] %vm1035_vm1, %v2174_v32  ;;  %v1880_v40 = vpop.eup %1879  ;;  %s2269_s29 = scalar_lea.vmem %s2413_s1, %s1991_s14 }
 0x1e6   : > { %936 = vrot.lane.b32.xlu0 %v1878_v34, %s1905_s30  ;;  %v906_v44 = vmul.f32 1.442695, %v875_v37  ;;  %1830 = vmatpush3.bf16.msra.mxu1 %v2253_v60  ;;  %v483_v63 = vld [vmem:[%s2269_s29] sm:$0xff]  ;;  %v485_v2 = vld [vmem:[%s2269_s29 + $0x10] sm:$0xff]  ;;  %v486_v3 = vld [vmem:[%s2269_s29 + $0x18] sm:$0xff] }
 0x1e7   : > { %1889 = vpow2.f32 %v900_v36  ;;  %v902_v42 = vmul.f32 1.442695, %v873_v39  ;;  %1823 = vmatprep.subr.bf16.mxu1 %v2260_v61  ;;  %v484_v4 = vld [vmem:[%s2269_s29 + $0x8] sm:$0xff]  ;;  %v487_v15 = vld [vmem:[%s2269_s29 + $0x20] sm:$0xff]  ;;  %v489_v28 = vld [vmem:[%s2269_s29 + $0x30] sm:$0xff] }
 0x1e8   : > { %938 = vrot.lane.b32.xlu1 %v1880_v40, %s1905_s30  ;;  %v488_v21 = vld [vmem:[%s2269_s29 + $0x28] sm:$0xff]  ;;  %v491_v36 = vld [vmem:[%s2269_s29 + $0x40] sm:$0xff] }
 0x1e9   : > { %v1882_v43 = vpop.eup %1881  ;;  %1891 = vpow2.f32 %v902_v42 }
 0x1ea   : > { %940 = vrot.lane.b32.xlu0 %v1882_v43, %s1905_s30  ;;  %1893 = vpow2.f32 %v904_v31  ;;  %1831 = vmatpush3.bf16.msra.mxu1 %v2260_v61  ;;  %v492_v31 = vld [vmem:[%s2269_s29 + $0x48] sm:$0xff] }
 0x1eb   : > { %v1884_v45 = vpop.eup %1883  ;;  %1895 = vpow2.f32 %v906_v44  ;;  %v493_v44 = vld [vmem:[%s2269_s29 + $0x50] sm:$0xff] }
 0x1ec   : > { %942 = vrot.lane.b32.xlu1 %v1884_v45, %s1905_s30  ;;  %v1886_v46 = vpop.eup %1885 }
 0x1ed   : > { %v1888_v47 = vpop.eup %1887 }
 0x1ee   : > { %944 = vrot.lane.b32.xlu0 %v1886_v46, %s1905_s30 }
 0x1f0   : > { %946 = vrot.lane.b32.xlu1 %v1888_v47, %s1905_s30 }
 0x1f1   : > { %v1890_v48 = vpop.eup %1889 }
 0x1f2   : > { %948 = vrot.lane.b32.xlu0 %v1890_v48, %s1905_s30  ;;  %v494_v48 = vld [vmem:[%s2269_s29 + $0x58] sm:$0xff] }
 0x1f3   : > { %v1892_v50 = vpop.eup %1891 }
 0x1f4   : > { %950 = vrot.lane.b32.xlu1 %v1892_v50, %s1905_s30  ;;  %v1894_v52 = vpop.eup %1893 }
 0x1f5   : > { %v1896_v54 = vpop.eup %1895 }
 0x1f6   : > { %952 = vrot.lane.b32.xlu0 %v1894_v52, %s1905_s30 }
 0x1f8   : > { %954 = vrot.lane.b32.xlu1 %v1896_v54, %s1905_s30  ;;  %v495_v54 = vld [vmem:[%s2269_s29 + $0x60] sm:$0xff] }
 0x1fa   : > { %1397 = vrot.lane.b32.xlu0 %v2071_v35, %s1905_s30 }
 0x1fc   : > { %1399 = vrot.lane.b32.xlu1 %v2085_v41, %s1905_s30 }
 0x1fe   : > { %1401 = vrot.lane.b32.xlu0 %v2068_v33, %s1905_s30 }
 0x200   : > { %1403 = vrot.lane.b32.xlu1 %v2078_v38, %s1905_s30 }
 0x202   : > { %1405 = vrot.lane.b32.xlu0 %v2099_v51, %s1905_s30 }
 0x204   : > { %1407 = vrot.lane.b32.xlu1 %v2113_v57, %s1905_s30 }
 0x206   : > { %1409 = vrot.lane.b32.xlu0 %v2096_v49, %s1905_s30 }
 0x208   : > { %1411 = vrot.lane.b32.xlu1 %v2105_v53, %s1905_s30 }
 0x20a   : > { %1413 = vrot.lane.b32.xlu0 %v2127_v5, %s1905_s30 }
 0x20c   : > { %1415 = vrot.lane.b32.xlu1 %v2143_v11, %s1905_s30 }
 0x20e   : > { %1417 = vrot.lane.b32.xlu0 %v2124_v1, %s1905_s30 }
 0x210   : > { %1419 = vrot.lane.b32.xlu1 %v2134_v7, %s1905_s30 }
 0x212   : > { %1421 = vrot.lane.b32.xlu0 %v2159_v24, %s1905_s30 }
 0x214   : > { %1423 = vrot.lane.b32.xlu1 %v2174_v32, %s1905_s30 }
 0x216   : > { %1425 = vrot.lane.b32.xlu0 %v2156_v20, %s1905_s30 }
 0x218   : > { %1427 = vrot.lane.b32.xlu1 %v2165_v26, %s1905_s30 }
 0x24b   : > { %v929_v62 = vpop.permute.xlu1 %928 }
 0x24c   : > { %v925_v0 = vpop.permute.xlu0 %924  ;;  %v974_v9 = vmul.f32 %v929_v62, %v485_v2 }
 0x24d   : > { %v972_v6 = vmul.f32 %v925_v0, %v483_v63  ;;  %v496_v63 = vld [vmem:[%s2269_s29 + $0x68] sm:$0xff] }
 0x24e   : > { %v990_v18 = vadd.f32 %v974_v9, %v2068_v33 }
 0x24f   : > { %v931_v8 = vpop.permute.xlu1 %930  ;;  %v988_v16 = vadd.f32 %v972_v6, %v2071_v35  ;;  %v490_v35 = vld [vmem:[%s2269_s29 + $0x38] sm:$0xff] }
 0x250   : > { %v975_v10 = vmul.f32 %v931_v8, %v486_v3  ;;  %v927_v12 = vpop.permute.xlu0 %926  ;;  %v497_v3 = vld [vmem:[%s2269_s29 + $0x70] sm:$0xff]  ;;  %v498_v8 = vld [vmem:[%s2269_s29 + $0x78] sm:$0xff] }
 0x251   : > { %v973_v13 = vmul.f32 %v927_v12, %v484_v4 }
 0x252   : > { %v991_v14 = vadd.f32 %v975_v10, %v2078_v38 }
 0x253   : > { %v989_v17 = vadd.f32 %v973_v13, %v2085_v41 }
 0x254   : > { %v933_v19 = vpop.permute.xlu0 %932  ;;  %v1005_v25 = vpack.c.bf16 %v991_v14, %v990_v18 }
 0x255   : > { %v1004_v22 = vpack.c.bf16 %v989_v17, %v988_v16  ;;  %v976_v23 = vmul.f32 %v933_v19, %v487_v15 }
 0x256   : > { %v935_v27 = vpop.permute.xlu1 %934 }
 0x257   : > { %v977_v29 = vmul.f32 %v935_v27, %v488_v21  ;;  %1770 = vmatprep.mubr.msk.bf16.mxu0 %vm1035_vm1, %v1004_v22  ;;  %v992_v41 = vadd.f32 %v976_v23, %v2099_v51 }
 0x258   : > { %1771 = vmatmul.mubr.msk.bf16.vlgmr.msra.gmra.mrb[16].mxu0 %vm1035_vm1, %v1005_v25  ;;  %v937_v38 = vpop.permute.xlu0 %936 }
 0x259   : > { %v993_v33 = vadd.f32 %v977_v29, %v2113_v57  ;;  %v978_v30 = vmul.f32 %v937_v38, %v489_v28  ;;  %1787 = vmatpush3.bf16.msra.mxu0 %v1857_v55  ;;  %v1863_v29 = vld [vmem:[%s2420_s8 + $0x30] sm:$0xff]   ;;  %v1864_v38 = vld [vmem:[%s2420_s8 + $0x38] sm:$0xff]  }
 0x25a   : > { %v939_v34 = vpop.permute.xlu1 %938  ;;  %1788 = vmatprep.subr.bf16.mxu0 %v2221_v56  ;;  %1824 = vmatprep.subr.bf16.mxu1 %v1863_v29 }
 0x25b   : > { %v1006_v37 = vpack.c.bf16 %v993_v33, %v992_v41  ;;  %v979_v39 = vmul.f32 %v939_v34, %v490_v35  ;;  %v994_v42 = vadd.f32 %v978_v30, %v2096_v49  ;;  %1832 = vmatpush3.bf16.msra.mxu1 %v1863_v29  ;;  %v1634_v35 = vld [vmem:[%s2419_s7] ss:$0 sm:$0xff] }
 0x25c   : > { %v941_v40 = vpop.permute.xlu0 %940  ;;  %1825 = vmatprep.subr.bf16.mxu1 %v1864_v38 }
 0x25d   : > { %v995_v43 = vadd.f32 %v979_v39, %v2105_v53  ;;  %v980_v51 = vmul.f32 %v941_v40, %v491_v36  ;;  %1774 = vmatprep.mubr.msk.bf16.mxu0 %vm1035_vm1, %v1006_v37  ;;  %1789 = vmatpush3.bf16.msra.mxu0 %v2221_v56 }
 0x25e   : > { %v943_v57 = vpop.permute.xlu1 %942  ;;  %1790 = vmatprep.subr.bf16.mxu0 %v2231_v58 }
 0x25f   : > { %v1007_v45 = vpack.c.bf16 %v995_v43, %v994_v42  ;;  %v981_v46 = vmul.f32 %v943_v57, %v492_v31  ;;  %v996_v50 = vadd.f32 %v980_v51, %v2127_v5  ;;  %1833 = vmatpush3.bf16.msra.mxu1 %v1864_v38 }
 0x260   : > { %v945_v47 = vpop.permute.xlu0 %944 }
 0x261   : > { %v997_v49 = vadd.f32 %v981_v46, %v2143_v11  ;;  %v982_v53 = vmul.f32 %v945_v47, %v493_v44  ;;  %1775 = vmatmul.mubr.msk.bf16.gmra.mrb[20].mxu0 %vm1035_vm1, %v1007_v45 }
 0x262   : > { %v947_v52 = vpop.permute.xlu1 %946  ;;  %1791 = vmatpush3.bf16.msra.mxu0 %v2231_v58 }
 0x263   : > { %v1008_v55 = vpack.c.bf16 %v997_v49, %v996_v50  ;;  %v983_v56 = vmul.f32 %v947_v52, %v494_v48  ;;  %1792 = vmatprep.subr.bf16.mxu0 %v2242_v59  ;;  %v998_v0 = vadd.f32 %v982_v53, %v2124_v1 }
 0x264   : > { %v949_v62 = vpop.permute.xlu0 %948 }
 0x265   : > { %v999_v5 = vadd.f32 %v983_v56, %v2134_v7  ;;  %v984_v11 = vmul.f32 %v949_v62, %v495_v54  ;;  %1778 = vmatprep.mubr.msk.bf16.mxu0 %vm1035_vm1, %v1008_v55 }
 0x266   : > { %v951_v2 = vpop.permute.xlu1 %950  ;;  %1793 = vmatpush3.bf16.msra.mxu0 %v2242_v59 }
 0x267   : > { %v1009_v58 = vpack.c.bf16 %v999_v5, %v998_v0  ;;  %v985_v4 = vmul.f32 %v951_v2, %v496_v63  ;;  %1794 = vmatprep.subr.bf16.mxu0 %v2253_v60  ;;  %v1000_v9 = vadd.f32 %v984_v11, %v2159_v24 }
 0x268   : > { %v953_v6 = vpop.permute.xlu0 %952 }
 0x269   : > { %v1001_v1 = vadd.f32 %v985_v4, %v2174_v32  ;;  %v986_v10 = vmul.f32 %v953_v6, %v497_v3  ;;  %1779 = vmatmul.mubr.msk.bf16.gmra.mrb[24].mxu0 %vm1035_vm1, %v1009_v58 }
 0x26a   : > { %v955_v7 = vpop.permute.xlu1 %954  ;;  %1795 = vmatpush3.bf16.msra.mxu0 %v2253_v60 }
 0x26b   : > { %v1010_v59 = vpack.c.bf16 %v1001_v1, %v1000_v9  ;;  %v987_v12 = vmul.f32 %v955_v7, %v498_v8  ;;  %1796 = vmatprep.subr.bf16.mxu0 %v2260_v61  ;;  %v1002_v32 = vadd.f32 %v986_v10, %v2156_v20 }
 0x26c   : > { %v1398_v24 = vpop.permute.xlu0 %1397 }
 0x26d   : > { %v1003_v13 = vadd.f32 %v987_v12, %v2165_v26  ;;  %1445 = vst.msk [vmem:[%s2318_s15] sm:$0xff] %vm1035_vm1, %v1398_v24  ;;  %1782 = vmatprep.mubr.msk.bf16.mxu0 %vm1035_vm1, %v1010_v59 }
 0x26e   : > { %v1400_v14 = vpop.permute.xlu1 %1399  ;;  %1797 = vmatpush3.bf16.msra.mxu0 %v2260_v61 }
 0x26f   : > { %v1011_v60 = vpack.c.bf16 %v1003_v13, %v1002_v32  ;;  %1446 = vst.msk [vmem:[%s2318_s15 + $0x8] sm:$0xff] %vm1035_vm1, %v1400_v14  ;;  %1798 = vmatprep.subr.bf16.mxu0 %v1863_v29 }
 0x270   : > { %v1402_v15 = vpop.permute.xlu0 %1401 }
 0x271   : > { %1447 = vst.msk [vmem:[%s2318_s15 + $0x10] sm:$0xff] %vm1035_vm1, %v1402_v15  ;;  %1783 = vmatmul.mubr.msk.bf16.gmra.mrb[28].mxu0 %vm1035_vm1, %v1011_v60 }
 0x272   : > { %v1404_v20 = vpop.permute.xlu1 %1403  ;;  %1799 = vmatpush3.bf16.msra.mxu0 %v1863_v29 }
 0x273   : > { %1448 = vst.msk [vmem:[%s2318_s15 + $0x18] sm:$0xff] %vm1035_vm1, %v1404_v20  ;;  %1800 = vmatprep.subr.bf16.mxu0 %v1864_v38 }
 0x274   : > { %v1406_v26 = vpop.permute.xlu0 %1405 }
 0x275   : > { %1449 = vst.msk [vmem:[%s2318_s15 + $0x20] sm:$0xff] %vm1035_vm1, %v1406_v26 }
 0x276   : > { %v1408_v61 = vpop.permute.xlu1 %1407  ;;  %1801 = vmatpush3.bf16.msra.mxu0 %v1864_v38 }
 0x277   : > { %1450 = vst.msk [vmem:[%s2318_s15 + $0x28] sm:$0xff] %vm1035_vm1, %v1408_v61 }
 0x278   : > { %v1410_v16 = vpop.permute.xlu0 %1409 }
 0x279   : > { %1451 = vst.msk [vmem:[%s2318_s15 + $0x30] sm:$0xff] %vm1035_vm1, %v1410_v16 }
 0x27a   : > { %v1412_v17 = vpop.permute.xlu1 %1411 }
 0x27b   : > { %1452 = vst.msk [vmem:[%s2318_s15 + $0x38] sm:$0xff] %vm1035_vm1, %v1412_v17 }
 0x27c   : > { %v1414_v18 = vpop.permute.xlu0 %1413 }
 0x27d   : > { %1453 = vst.msk [vmem:[%s2318_s15 + $0x40] sm:$0xff] %vm1035_vm1, %v1414_v18 }
 0x27e   : > { %v1416_v19 = vpop.permute.xlu1 %1415 }
 0x27f   : > { %1454 = vst.msk [vmem:[%s2318_s15 + $0x48] sm:$0xff] %vm1035_vm1, %v1416_v19 }
 0x280   : > { %v1418_v21 = vpop.permute.xlu0 %1417 }
 0x281   : > { %1455 = vst.msk [vmem:[%s2318_s15 + $0x50] sm:$0xff] %vm1035_vm1, %v1418_v21 }
 0x282   : > { %v1420_v22 = vpop.permute.xlu1 %1419 }
 0x283   : > { %1456 = vst.msk [vmem:[%s2318_s15 + $0x58] sm:$0xff] %vm1035_vm1, %v1420_v22  ;;  %v1645_v22 = vld [vmem:[%s2421_s9] ss:$0 sm:$0xff] }
 0x284   : > { %v1422_v23 = vpop.permute.xlu0 %1421 }
 0x285   : > { %1457 = vst.msk [vmem:[%s2318_s15 + $0x60] sm:$0xff] %vm1035_vm1, %v1422_v23 }
 0x286   : > { %v1424_v25 = vpop.permute.xlu1 %1423 }
 0x287   : > { %1458 = vst.msk [vmem:[%s2318_s15 + $0x68] sm:$0xff] %vm1035_vm1, %v1424_v25 }
 0x288   : > { %v1426_v27 = vpop.permute.xlu0 %1425 }
 0x289   : > { %1459 = vst.msk [vmem:[%s2318_s15 + $0x70] sm:$0xff] %vm1035_vm1, %v1426_v27 }
 0x28a   : > { %v1428_v28 = vpop.permute.xlu1 %1427 }
 0x28b   : > { %1460 = vst.msk [vmem:[%s2318_s15 + $0x78] sm:$0xff] %vm1035_vm1, %v1428_v28 }
 0x32b   : > { %v1772_v41 = vpop.f32.mrb[16].mxu0 }
 0x32c   : > { %v1103_v33 = vadd.f32 %v1772_v41, %v1634_v35  ;;  %v1094_v30 = vpop.f32.mrb[17].mxu0 }
 0x32d   : > { %v1095_v34 = vadd.f32 %v1634_v35, %v1094_v30  ;;  %v1773_v36 = vpop.f32.mrb[18].mxu0 }
 0x32e   : > { %v1106_v37 = vadd.f32 %v1773_v36, %v1634_v35  ;;  %v1097_v39 = vpop.f32.mrb[19].mxu0  ;;  %v1159_v31 = vmax.f32 %v1103_v33, 0.0 }
 0x32f   : > { %v1098_v40 = vadd.f32 %v1634_v35, %v1097_v39  ;;  %v1157_v43 = vmax.f32 %v1095_v34, 0.0 }
 0x330   : > { %v1160_v42 = vmax.f32 %v1106_v37, 0.0 }
 0x331   : > { %v1158_v51 = vmax.f32 %v1098_v40, 0.0 }
 0x332   : > { %v1174_v57 = vpack.c.bf16 %v1160_v42, %v1159_v31 }
 0x333   : > { %v1173_v44 = vpack.c.bf16 %v1158_v51, %v1157_v43 }
 0x334   : > { %v1776_v45 = vpop.f32.mrb[20].mxu0 }
 0x335   : > { %v1119_v46 = vadd.f32 %v1776_v45, %v1634_v35  ;;  %v1110_v47 = vpop.f32.mrb[21].mxu0  ;;  %1802 = vmatprep.mubr.bf16.mxu0 %v1173_v44 }
 0x336   : > { %v1111_v48 = vadd.f32 %v1634_v35, %v1110_v47  ;;  %v1777_v50 = vpop.f32.mrb[22].mxu0  ;;  %1803 = vmatmul.mubr.bf16.vlgmr.msra.gmra.mrb[32].mxu0 %v1174_v57 }
 0x337   : > { %v1122_v49 = vadd.f32 %v1777_v50, %v1634_v35  ;;  %v1113_v53 = vpop.f32.mrb[23].mxu0  ;;  %v1163_v54 = vmax.f32 %v1119_v46, 0.0 }
 0x338   : > { %v1114_v52 = vadd.f32 %v1634_v35, %v1113_v53  ;;  %v1161_v56 = vmax.f32 %v1111_v48, 0.0 }
 0x339   : > { %v1164_v55 = vmax.f32 %v1122_v49, 0.0 }
 0x33a   : > { %v1162_v62 = vmax.f32 %v1114_v52, 0.0 }
 0x33b   : > { %v1176_v63 = vpack.c.bf16 %v1164_v55, %v1163_v54 }
 0x33c   : > { %v1175_v0 = vpack.c.bf16 %v1162_v62, %v1161_v56  ;;  %v1780_v5 = vpop.f32.mrb[24].mxu0 }
 0x33d   : > { %v1135_v11 = vadd.f32 %v1780_v5, %v1634_v35  ;;  %v1126_v2 = vpop.f32.mrb[25].mxu0 }
 0x33e   : > { %v1127_v3 = vadd.f32 %v1634_v35, %v1126_v2  ;;  %v1781_v58 = vpop.f32.mrb[26].mxu0  ;;  %1806 = vmatprep.mubr.bf16.mxu1 %v1175_v0 }
 0x33f   : > { %v1138_v4 = vadd.f32 %v1781_v58, %v1634_v35  ;;  %v1129_v6 = vpop.f32.mrb[27].mxu0  ;;  %1807 = vmatmul.mubr.bf16.vlgmr.msra.gmra.mrb[16].mxu1 %v1176_v63  ;;  %v1167_v9 = vmax.f32 %v1135_v11, 0.0 }
 0x340   : > { %v1130_v8 = vadd.f32 %v1634_v35, %v1129_v6  ;;  %v1165_v10 = vmax.f32 %v1127_v3, 0.0 }
 0x341   : > { %v1168_v1 = vmax.f32 %v1138_v4, 0.0 }
 0x342   : > { %v1166_v7 = vmax.f32 %v1130_v8, 0.0 }
 0x343   : > { %v1178_v59 = vpack.c.bf16 %v1168_v1, %v1167_v9 }
 0x344   : > { %v1177_v12 = vpack.c.bf16 %v1166_v7, %v1165_v10  ;;  %v1784_v24 = vpop.f32.mrb[28].mxu0 }
 0x345   : > { %v1151_v32 = vadd.f32 %v1784_v24, %v1634_v35  ;;  %v1142_v13 = vpop.f32.mrb[29].mxu0 }
 0x346   : > { %v1143_v14 = vadd.f32 %v1634_v35, %v1142_v13  ;;  %v1785_v60 = vpop.f32.mrb[30].mxu0  ;;  %1810 = vmatprep.mubr.bf16.mxu1 %v1177_v12 }
 0x347   : > { %v1154_v15 = vadd.f32 %v1785_v60, %v1634_v35  ;;  %v1145_v20 = vpop.f32.mrb[31].mxu0  ;;  %1811 = vmatmul.mubr.bf16.gmra.mrb[20].mxu1 %v1178_v59  ;;  %v1171_v61 = vmax.f32 %v1151_v32, 0.0 }
 0x348   : > { %v1146_v26 = vadd.f32 %v1634_v35, %v1145_v20  ;;  %v1169_v17 = vmax.f32 %v1143_v14, 0.0 }
 0x349   : > { %v1172_v16 = vmax.f32 %v1154_v15, 0.0 }
 0x34a   : > { %v1170_v18 = vmax.f32 %v1146_v26, 0.0 }
 0x34b   : > { %v1180_v19 = vpack.c.bf16 %v1172_v16, %v1171_v61 }
 0x34c   : > { %v1179_v21 = vpack.c.bf16 %v1170_v18, %v1169_v17 }
 0x34e   : > { %1814 = vmatprep.mubr.bf16.mxu1 %v1179_v21 }
 0x34f   : > { %1815 = vmatmul.mubr.bf16.gmra.mrb[24].mxu1 %v1180_v19 }
 0x409   : > { %v1804_v23 = vpop.f32.mrb[32].mxu0 }
 0x40a   : > { %v1295_v25 = vadd.f32 %v1804_v23, %v1645_v22  ;;  %v1286_v27 = vpop.f32.mrb[33].mxu0 }
 0x40b   : > { %v1287_v28 = vadd.f32 %v1645_v22, %v1286_v27  ;;  %v1805_v29 = vpop.f32.mrb[34].mxu0 }
 0x40c   : > { %1351 = vst.msk [vmem:[%s2375_s27 + $0x10] sm:$0xff] %vm546_vm0, %v1295_v25  ;;  %v1298_v38 = vadd.f32 %v1805_v29, %v1645_v22  ;;  %v1289_v35 = vpop.f32.mrb[35].mxu0 }
 0x40d   : > { %1349 = vst.msk [vmem:[%s2375_s27] sm:$0xff] %vm546_vm0, %v1287_v28  ;;  %v1290_v41 = vadd.f32 %v1645_v22, %v1289_v35 }
 0x40e   : > { %1352 = vst.msk [vmem:[%s2375_s27 + $0x18] sm:$0xff] %vm546_vm0, %v1298_v38 }
 0x40f   : > { %1350 = vst.msk [vmem:[%s2375_s27 + $0x8] sm:$0xff] %vm546_vm0, %v1290_v41 }
 0x412   : > { %v1808_v33 = vpop.f32.mrb[16].mxu1 }
 0x413   : > { %v1311_v30 = vadd.f32 %v1808_v33, %v1645_v22  ;;  %v1302_v34 = vpop.f32.mrb[17].mxu1 }
 0x414   : > { %v1303_v36 = vadd.f32 %v1645_v22, %v1302_v34  ;;  %v1809_v37 = vpop.f32.mrb[18].mxu1 }
 0x415   : > { %1355 = vst.msk [vmem:[%s2375_s27 + $0x30] sm:$0xff] %vm546_vm0, %v1311_v30  ;;  %v1314_v39 = vadd.f32 %v1809_v37, %v1645_v22  ;;  %v1305_v40 = vpop.f32.mrb[19].mxu1 }
 0x416   : > { %1353 = vst.msk [vmem:[%s2375_s27 + $0x20] sm:$0xff] %vm546_vm0, %v1303_v36  ;;  %v1306_v31 = vadd.f32 %v1645_v22, %v1305_v40 }
 0x417   : > { %1356 = vst.msk [vmem:[%s2375_s27 + $0x38] sm:$0xff] %vm546_vm0, %v1314_v39 }
 0x418   : > { %1354 = vst.msk [vmem:[%s2375_s27 + $0x28] sm:$0xff] %vm546_vm0, %v1306_v31 }
 0x41a   : > { %v1812_v42 = vpop.f32.mrb[20].mxu1 }
 0x41b   : > { %v1327_v43 = vadd.f32 %v1812_v42, %v1645_v22  ;;  %v1318_v51 = vpop.f32.mrb[21].mxu1 }
 0x41c   : > { %v1319_v57 = vadd.f32 %v1645_v22, %v1318_v51  ;;  %v1813_v44 = vpop.f32.mrb[22].mxu1 }
 0x41d   : > { %1359 = vst.msk [vmem:[%s2375_s27 + $0x50] sm:$0xff] %vm546_vm0, %v1327_v43  ;;  %v1330_v45 = vadd.f32 %v1813_v44, %v1645_v22  ;;  %v1321_v46 = vpop.f32.mrb[23].mxu1 }
 0x41e   : > { %1357 = vst.msk [vmem:[%s2375_s27 + $0x40] sm:$0xff] %vm546_vm0, %v1319_v57  ;;  %v1322_v47 = vadd.f32 %v1645_v22, %v1321_v46 }
 0x41f   : > { %1360 = vst.msk [vmem:[%s2375_s27 + $0x58] sm:$0xff] %vm546_vm0, %v1330_v45 }
 0x420   : > { %1358 = vst.msk [vmem:[%s2375_s27 + $0x48] sm:$0xff] %vm546_vm0, %v1322_v47 }
 0x422   : > { %v1816_v48 = vpop.f32.mrb[24].mxu1 }
 0x423   : > { %v1343_v50 = vadd.f32 %v1816_v48, %v1645_v22  ;;  %v1334_v49 = vpop.f32.mrb[25].mxu1 }
 0x424   : > { %v1335_v53 = vadd.f32 %v1645_v22, %v1334_v49  ;;  %v1817_v52 = vpop.f32.mrb[26].mxu1 }
 0x425   : > { %1363 = vst.msk [vmem:[%s2375_s27 + $0x70] sm:$0xff] %vm546_vm0, %v1343_v50  ;;  %v1346_v54 = vadd.f32 %v1817_v52, %v1645_v22  ;;  %v1337_v55 = vpop.f32.mrb[27].mxu1 }
 0x426   : > { %1361 = vst.msk [vmem:[%s2375_s27 + $0x60] sm:$0xff] %vm546_vm0, %v1335_v53  ;;  %v1338_v56 = vadd.f32 %v1645_v22, %v1337_v55 }
 0x427   : > { %1364 = vst.msk [vmem:[%s2375_s27 + $0x78] sm:$0xff] %vm546_vm0, %v1346_v54 }
 0x428   : > { %1362 = vst.msk [vmem:[%s2375_s27 + $0x68] sm:$0xff] %vm546_vm0, %v1338_v56 }
 0x429 PF: > { %s23_s21 = sadd.s32 1, %s1903_s21  }
 0x42a   : > { %p20_p4 = scmp.ge.s32.totalorder %s23_s21, 4  }
 0x42c   :  { %22 = sbr.rel (!%p20_p4) target bundleno = 1 (0x1), region = 117 }

</bundles_post_ra>
